<compile_context>
chip_gen: v7x
topology: tpu7x:2x2x1
jax: 0.10.0
libtpu: 0.0.40
codegen_flags: <defaults>
</compile_context>

<pallas_src>
import functools
import math

import jax
import jax.numpy as jnp
from jax.experimental import pallas as pl
from jax.experimental.pallas import tpu as pltpu


def _dice_bce_kernel(x_ref, t_ref, out_ref, ce_acc, inter_acc, denom_acc,
                     *, num_classes, num_strips, strip, unroll):
    # x_ref:   (1, C, block_rows, 128) logits block (native dtype)
    # t_ref:   (1, block_rows, 128)    targets block (native integer dtype)
    # out_ref: (1, 8, 128) f32 per-batch partials (row0=CE, row1=inter, row2=denom)
    # *_acc:   (strip, 128) f32 VMEM accumulators carried across spatial tiles
    si = pl.program_id(1)

    @pl.when(si == 0)
    def _init():
        ce_acc[...] = jnp.zeros_like(ce_acc)
        inter_acc[...] = jnp.zeros_like(inter_acc)
        denom_acc[...] = jnp.zeros_like(denom_acc)

    def strip_body(r, carry):
        ce_c, inter_c, denom_c = carry
        off = pl.multiple_of(r * strip, strip)
        t = t_ref[0, pl.ds(off, strip), :].astype(jnp.int32)
        xs = [x_ref[0, k, pl.ds(off, strip), :].astype(jnp.float32)
              for k in range(num_classes)]

        # softmax cross-entropy with integer targets (channel-unrolled).
        # TODO(synk): for large C (>16) replace the static channel unroll with
        # a lax.fori_loop over channels (online max / sum-exp) to bound code
        # size and VMEM temporaries.
        m = xs[0]
        for k in range(1, num_classes):
            m = jnp.maximum(m, xs[k])
        se = jnp.exp(xs[0] - m)
        tgt_logit = jnp.where(t == 0, xs[0], 0.0)
        for k in range(1, num_classes):
            se = se + jnp.exp(xs[k] - m)
            tgt_logit = tgt_logit + jnp.where(t == k, xs[k], 0.0)
        ce = (m - tgt_logit) + jnp.log(se)

        # dice terms: pred = (argmax over C) > 0.5  <=>  channel-0 logit is
        # strictly below the row max (argmax ties resolve to the first index).
        pred_pos = (xs[0] < m).astype(jnp.float32)
        tgt_f = t.astype(jnp.float32)

        return (ce_c + ce,
                inter_c + pred_pos * tgt_f,
                denom_c + (pred_pos + tgt_f))

    carry = (ce_acc[...], inter_acc[...], denom_acc[...])
    carry = jax.lax.fori_loop(0, num_strips, strip_body, carry, unroll=unroll)
    ce_acc[...], inter_acc[...], denom_acc[...] = carry

    @pl.when(si == pl.num_programs(1) - 1)
    def _finish():
        ce_s = jnp.sum(ce_acc[...])
        inter_s = jnp.sum(inter_acc[...])
        denom_s = jnp.sum(denom_acc[...])
        row = jax.lax.broadcasted_iota(jnp.int32, (8, 128), 0)
        out_ref[0] = jnp.where(row == 0, ce_s,
                               jnp.where(row == 1, inter_s, denom_s))


def _round_up(a, b):
    return (a + b - 1) // b * b


def dice_bce_loss(inputs, targets, smooth=1.0, block_rows=512,
                  vmem_budget_bytes=16 * 1024 * 1024):
    """0.05 * softmax cross-entropy + 0.95 * argmax-dice loss.

    inputs:  (N, C, H, W) float logits (f32 or bf16; bf16 halves HBM bytes).
    targets: (N, H, W) integer class ids in their native dtype
             (int32 / int8 / uint8 / bool all accepted without conversion).
    """
    n, c, h, w = inputs.shape
    s = h * w

    # copy-free views, native dtypes (no wrapper transpose / upcast passes)
    x = inputs.reshape(n, c, s)
    t = targets.reshape(n, s)

    x_bytes = x.dtype.itemsize
    t_bytes = t.dtype.itemsize

    # strip = sublane granularity of the register-resident inner loop; must
    # cover the native sublane tiling of both dtypes (f32:8, bf16:16, int8:32).
    strip = max(8, 8 * (4 // max(1, x_bytes)), 8 * (4 // max(1, t_bytes)))

    # Generation-aware VMEM budget (never above a quarter of physical VMEM).
    budget = vmem_budget_bytes
    try:
        budget = min(budget, pltpu.get_tpu_info().vmem_capacity_bytes // 4)
    except Exception:
        pass

    rows = pl.cdiv(s, 128)
    rows_min = _round_up(rows, strip)

    # block_rows from the VMEM budget: double-buffered inputs per grid step.
    per_row_bytes = 2 * 128 * (c * x_bytes + t_bytes)
    cap = max(strip, min(block_rows, budget // per_row_bytes))
    if rows_min <= cap:
        br = rows_min                        # one spatial tile per batch image
    else:
        br = (cap // strip) * strip          # multiple of strip (tile-aligned)

    s_block = br * 128
    s_pad = _round_up(s, s_block)
    pad = s_pad - s
    if pad:
        # only copies when H*W is not a multiple of block_rows*128; padded
        # cells are corrected for analytically below (no in-kernel mask).
        x = jnp.pad(x, ((0, 0), (0, 0), (0, pad)))
        t = jnp.pad(t, ((0, 0), (0, pad)))

    r_total = s_pad // 128
    x = x.reshape(n, c, r_total, 128)
    t = t.reshape(n, r_total, 128)
    num_tiles = r_total // br
    num_strips = br // strip

    unroll = 1
    for u in (8, 4, 2):
        if num_strips % u == 0:
            unroll = u
            break

    kernel = functools.partial(
        _dice_bce_kernel,
        num_classes=c,
        num_strips=num_strips,
        strip=strip,
        unroll=unroll,
    )

    parts = pl.pallas_call(
        kernel,
        out_shape=jax.ShapeDtypeStruct((n, 8, 128), jnp.float32),
        grid_spec=pltpu.PrefetchScalarGridSpec(
            num_scalar_prefetch=0,
            grid=(n, num_tiles),
            in_specs=[
                pl.BlockSpec((1, c, br, 128), lambda b, si: (b, 0, si, 0)),
                pl.BlockSpec((1, br, 128), lambda b, si: (b, si, 0)),
            ],
            out_specs=pl.BlockSpec((1, 8, 128), lambda b, si: (b, 0, 0)),
            scratch_shapes=[pltpu.VMEM((strip, 128), jnp.float32)] * 3,
        ),
        compiler_params=pltpu.CompilerParams(
            # batch axis "parallel" -> dual-TensorCore split on v7x (neutral on
            # v5e/v6e); the spatial reduction axis stays "arbitrary" because
            # the scratch accumulators carry across it.
            dimension_semantics=("parallel", "arbitrary")),
    )(x, t)

    ce_sum = jnp.sum(parts[:, 0, 0])
    inter = jnp.sum(parts[:, 1, 0])
    denom = jnp.sum(parts[:, 2, 0])
    if pad:
        # each zero-padded cell contributes exactly log(C) to CE, 0 to dice
        ce_sum = ce_sum - jnp.float32(n * pad * math.log(c))
    bce = ce_sum / jnp.float32(n * s)
    dice = 1.0 - (2.0 * inter + smooth) / (denom + smooth)
    return 0.05 * bce + 0.95 * dice


def _reference(inputs, targets, smooth=1.0):
    n, c, h, w = inputs.shape
    logits = jnp.transpose(inputs, (0, 2, 3, 1)).reshape(-1, c).astype(jnp.float32)
    tflat = targets.reshape(-1)
    lse = jax.scipy.special.logsumexp(logits, axis=-1)
    ce = jnp.mean(lse - logits[jnp.arange(logits.shape[0]), tflat])
    pred = (jnp.argmax(logits, axis=-1) > 0).astype(jnp.float32)
    tgt_f = tflat.astype(jnp.float32)
    inter = jnp.sum(pred * tgt_f)
    dice = 1.0 - (2.0 * inter + smooth) / (jnp.sum(pred) + jnp.sum(tgt_f) + smooth)
    return 0.05 * ce + 0.95 * dice


if __name__ == "__main__":
    # DiceBCELoss has no learnable parameters; only inputs/targets are needed.
    key = jax.random.PRNGKey(0)
    k1, k2 = jax.random.split(key)
    n, c, h, w = 2, 4, 16, 16
    inputs = jax.random.normal(k1, (n, c, h, w), dtype=jnp.float32)
    targets = jax.random.randint(k2, (n, h, w), 0, 2, dtype=jnp.int32)

    loss = dice_bce_loss(inputs, targets)
    loss = jax.block_until_ready(loss)

    ref = _reference(inputs, targets)
    assert jnp.allclose(loss, ref, rtol=1e-5, atol=1e-5), (float(loss), float(ref))
    print("KERNEL_OK")
</pallas_src>

<mosaic_0001>
module attributes {stable_mosaic.version = 11 : i64} {
  func.func @_dice_bce_kernel(%arg0: i32, %arg1: i32, %arg2: memref<1x4x8x128xf32, #tpu.memory_space<vmem>>, %arg3: memref<1x8x128xi32, #tpu.memory_space<vmem>>, %arg4: memref<1x8x128xf32, #tpu.memory_space<vmem>>, %arg5: memref<8x128xf32, #tpu.memory_space<vmem>>, %arg6: memref<8x128xf32, #tpu.memory_space<vmem>>, %arg7: memref<8x128xf32, #tpu.memory_space<vmem>>) attributes {dimension_semantics = [#tpu.dimension_semantics<parallel>, #tpu.dimension_semantics<arbitrary>], iteration_bounds = array<i64: 2, 1>, scalar_prefetch = 0 : i64, scratch_operands = 3 : i64, tpu.core_type = #tpu.core_type<tc>, window_params = [{transform_indices = @transform_0, window_bounds = array<i64: 1, 4, 8, 128>}, {transform_indices = @transform_1, window_bounds = array<i64: 1, 8, 128>}, {transform_indices = @transform_2, window_bounds = array<i64: 1, 8, 128>}]} {
    %c0_i32 = arith.constant 0 : i32
    %0 = arith.cmpi eq, %arg1, %c0_i32 : i32
    %1 = arith.extui %0 : i1 to i32
    %c0_i32_0 = arith.constant 0 : i32
    %2 = arith.cmpi ne, %1, %c0_i32_0 : i32
    scf.if %2 {
      %cst_31 = arith.constant 0.000000e+00 : f32
      %74 = vector.broadcast %cst_31 : f32 to vector<8x128xf32>
      %c0_32 = arith.constant 0 : index
      %c0_33 = arith.constant 0 : index
      %75 = vector.load %arg5[%c0_32, %c0_33] : memref<8x128xf32, #tpu.memory_space<vmem>>, vector<8x128xf32>
      tpu.vector_store %arg5[%c0_32, %c0_33], %74 {strides = array<i32>} : memref<8x128xf32, #tpu.memory_space<vmem>>, vector<8x128xf32>,
      %cst_34 = arith.constant 0.000000e+00 : f32
      %76 = vector.broadcast %cst_34 : f32 to vector<8x128xf32>
      %c0_35 = arith.constant 0 : index
      %c0_36 = arith.constant 0 : index
      %77 = vector.load %arg6[%c0_35, %c0_36] : memref<8x128xf32, #tpu.memory_space<vmem>>, vector<8x128xf32>
      tpu.vector_store %arg6[%c0_35, %c0_36], %76 {strides = array<i32>} : memref<8x128xf32, #tpu.memory_space<vmem>>, vector<8x128xf32>,
      %cst_37 = arith.constant 0.000000e+00 : f32
      %78 = vector.broadcast %cst_37 : f32 to vector<8x128xf32>
      %c0_38 = arith.constant 0 : index
      %c0_39 = arith.constant 0 : index
      %79 = vector.load %arg7[%c0_38, %c0_39] : memref<8x128xf32, #tpu.memory_space<vmem>>, vector<8x128xf32>
      tpu.vector_store %arg7[%c0_38, %c0_39], %78 {strides = array<i32>} : memref<8x128xf32, #tpu.memory_space<vmem>>, vector<8x128xf32>,
    } else {
    }
    %c0 = arith.constant 0 : index
    %c0_1 = arith.constant 0 : index
    %3 = vector.load %arg5[%c0, %c0_1] : memref<8x128xf32, #tpu.memory_space<vmem>>, vector<8x128xf32>
    %c0_2 = arith.constant 0 : index
    %c0_3 = arith.constant 0 : index
    %4 = vector.load %arg6[%c0_2, %c0_3] : memref<8x128xf32, #tpu.memory_space<vmem>>, vector<8x128xf32>
    %c0_4 = arith.constant 0 : index
    %c0_5 = arith.constant 0 : index
    %5 = vector.load %arg7[%c0_4, %c0_5] : memref<8x128xf32, #tpu.memory_space<vmem>>, vector<8x128xf32>
    %c0_i32_6 = arith.constant 0 : i32
    %c8_i32 = arith.constant 8 : i32
    %6 = arith.muli %c0_i32_6, %c8_i32 : i32
    %7 = tpu.assume_multiple %6, 8 : i32
    %c0_7 = arith.constant 0 : index
    %8 = arith.index_cast %7 : i32 to index
    %c0_8 = arith.constant 0 : index
    %9 = vector.load %arg3[%c0_7, %8, %c0_8] : memref<1x8x128xi32, #tpu.memory_space<vmem>>, vector<1x8x128xi32>
    %10 = vector.shape_cast %9 : vector<1x8x128xi32> to vector<8x128xi32>
    %c0_9 = arith.constant 0 : index
    %c0_10 = arith.constant 0 : index
    %11 = arith.index_cast %7 : i32 to index
    %c0_11 = arith.constant 0 : index
    %12 = vector.load %arg2[%c0_9, %c0_10, %11, %c0_11] : memref<1x4x8x128xf32, #tpu.memory_space<vmem>>, vector<1x1x8x128xf32>
    %13 = vector.shape_cast %12 : vector<1x1x8x128xf32> to vector<8x128xf32>
    %c0_12 = arith.constant 0 : index
    %c1 = arith.constant 1 : index
    %14 = arith.index_cast %7 : i32 to index
    %c0_13 = arith.constant 0 : index
    %15 = vector.load %arg2[%c0_12, %c1, %14, %c0_13] : memref<1x4x8x128xf32, #tpu.memory_space<vmem>>, vector<1x1x8x128xf32>
    %16 = vector.shape_cast %15 : vector<1x1x8x128xf32> to vector<8x128xf32>
    %c0_14 = arith.constant 0 : index
    %c2 = arith.constant 2 : index
    %17 = arith.index_cast %7 : i32 to index
    %c0_15 = arith.constant 0 : index
    %18 = vector.load %arg2[%c0_14, %c2, %17, %c0_15] : memref<1x4x8x128xf32, #tpu.memory_space<vmem>>, vector<1x1x8x128xf32>
    %19 = vector.shape_cast %18 : vector<1x1x8x128xf32> to vector<8x128xf32>
    %c0_16 = arith.constant 0 : index
    %c3 = arith.constant 3 : index
    %20 = arith.index_cast %7 : i32 to index
    %c0_17 = arith.constant 0 : index
    %21 = vector.load %arg2[%c0_16, %c3, %20, %c0_17] : memref<1x4x8x128xf32, #tpu.memory_space<vmem>>, vector<1x1x8x128xf32>
    %22 = vector.shape_cast %21 : vector<1x1x8x128xf32> to vector<8x128xf32>
    %23 = arith.maximumf %13, %16 : vector<8x128xf32>
    %24 = arith.maximumf %23, %19 : vector<8x128xf32>
    %25 = arith.maximumf %24, %22 : vector<8x128xf32>
    %26 = arith.subf %13, %25 : vector<8x128xf32>
    %27 = math.exp %26 : vector<8x128xf32>
    %c0_i32_18 = arith.constant 0 : i32
    %28 = vector.broadcast %c0_i32_18 : i32 to vector<8x128xi32>
    %29 = arith.cmpi eq, %10, %28 : vector<8x128xi32>
    %cst = arith.constant 0.000000e+00 : f32
    %30 = vector.broadcast %cst : f32 to vector<8x128xf32>
    %31 = arith.select %29, %13, %30 : vector<8x128xi1>, vector<8x128xf32>
    %32 = arith.subf %16, %25 : vector<8x128xf32>
    %33 = math.exp %32 : vector<8x128xf32>
    %34 = arith.addf %27, %33 : vector<8x128xf32>
    %c1_i32 = arith.constant 1 : i32
    %35 = vector.broadcast %c1_i32 : i32 to vector<8x128xi32>
    %36 = arith.cmpi eq, %10, %35 : vector<8x128xi32>
    %cst_19 = arith.constant 0.000000e+00 : f32
    %37 = vector.broadcast %cst_19 : f32 to vector<8x128xf32>
    %38 = arith.select %36, %16, %37 : vector<8x128xi1>, vector<8x128xf32>
    %39 = arith.addf %31, %38 : vector<8x128xf32>
    %40 = arith.subf %19, %25 : vector<8x128xf32>
    %41 = math.exp %40 : vector<8x128xf32>
    %42 = arith.addf %34, %41 : vector<8x128xf32>
    %c2_i32 = arith.constant 2 : i32
    %43 = vector.broadcast %c2_i32 : i32 to vector<8x128xi32>
    %44 = arith.cmpi eq, %10, %43 : vector<8x128xi32>
    %cst_20 = arith.constant 0.000000e+00 : f32
    %45 = vector.broadcast %cst_20 : f32 to vector<8x128xf32>
    %46 = arith.select %44, %19, %45 : vector<8x128xi1>, vector<8x128xf32>
    %47 = arith.addf %39, %46 : vector<8x128xf32>
    %48 = arith.subf %22, %25 : vector<8x128xf32>
    %49 = math.exp %48 : vector<8x128xf32>
    %50 = arith.addf %42, %49 : vector<8x128xf32>
    %c3_i32 = arith.constant 3 : i32
    %51 = vector.broadcast %c3_i32 : i32 to vector<8x128xi32>
    %52 = arith.cmpi eq, %10, %51 : vector<8x128xi32>
    %cst_21 = arith.constant 0.000000e+00 : f32
    %53 = vector.broadcast %cst_21 : f32 to vector<8x128xf32>
    %54 = arith.select %52, %22, %53 : vector<8x128xi1>, vector<8x128xf32>
    %55 = arith.addf %47, %54 : vector<8x128xf32>
    %56 = arith.subf %25, %55 : vector<8x128xf32>
    %57 = math.log %50 : vector<8x128xf32>
    %58 = arith.addf %56, %57 : vector<8x128xf32>
    %59 = arith.cmpf olt, %13, %25 : vector<8x128xf32>
    %60 = arith.extui %59 : vector<8x128xi1> to vector<8x128xi32>
    %61 = arith.sitofp %60 : vector<8x128xi32> to vector<8x128xf32>
    %62 = arith.sitofp %10 : vector<8x128xi32> to vector<8x128xf32>
    %63 = arith.addf %3, %58 : vector<8x128xf32>
    %64 = arith.mulf %61, %62 : vector<8x128xf32>
    %65 = arith.addf %4, %64 : vector<8x128xf32>
    %66 = arith.addf %61, %62 : vector<8x128xf32>
    %67 = arith.addf %5, %66 : vector<8x128xf32>
    %c1_i32_22 = arith.constant 1 : i32
    %c0_23 = arith.constant 0 : index
    %c0_24 = arith.constant 0 : index
    %68 = vector.load %arg5[%c0_23, %c0_24] : memref<8x128xf32, #tpu.memory_space<vmem>>, vector<8x128xf32>
    tpu.vector_store %arg5[%c0_23, %c0_24], %63 {strides = array<i32>} : memref<8x128xf32, #tpu.memory_space<vmem>>, vector<8x128xf32>,
    %c0_25 = arith.constant 0 : index
    %c0_26 = arith.constant 0 : index
    %69 = vector.load %arg6[%c0_25, %c0_26] : memref<8x128xf32, #tpu.memory_space<vmem>>, vector<8x128xf32>
    tpu.vector_store %arg6[%c0_25, %c0_26], %65 {strides = array<i32>} : memref<8x128xf32, #tpu.memory_space<vmem>>, vector<8x128xf32>,
    %c0_27 = arith.constant 0 : index
    %c0_28 = arith.constant 0 : index
    %70 = vector.load %arg7[%c0_27, %c0_28] : memref<8x128xf32, #tpu.memory_space<vmem>>, vector<8x128xf32>
    tpu.vector_store %arg7[%c0_27, %c0_28], %67 {strides = array<i32>} : memref<8x128xf32, #tpu.memory_space<vmem>>, vector<8x128xf32>,
    %c0_i32_29 = arith.constant 0 : i32
    %71 = arith.cmpi eq, %arg1, %c0_i32_29 : i32
    %72 = arith.extui %71 : i1 to i32
    %c0_i32_30 = arith.constant 0 : i32
    %73 = arith.cmpi ne, %72, %c0_i32_30 : i32
    scf.if %73 {
      %c0_31 = arith.constant 0 : index
      %c0_32 = arith.constant 0 : index
      %74 = vector.load %arg5[%c0_31, %c0_32] : memref<8x128xf32, #tpu.memory_space<vmem>>, vector<8x128xf32>
      %75 = vector.shape_cast %74 : vector<8x128xf32> to vector<1x8x128xf32>
      %cst_33 = arith.constant dense<0.000000e+00> : vector<1xf32>
      %76 = vector.multi_reduction <add>, %75, %cst_33 [1, 2] : vector<1x8x128xf32> to vector<1xf32>
      %77 = vector.shape_cast %76 : vector<1xf32> to vector<1x1x1xf32>
      %78 = vector.extract %77[0, 0, 0] : f32 from vector<1x1x1xf32>
      %c0_34 = arith.constant 0 : index
      %c0_35 = arith.constant 0 : index
      %79 = vector.load %arg6[%c0_34, %c0_35] : memref<8x128xf32, #tpu.memory_space<vmem>>, vector<8x128xf32>
      %80 = vector.shape_cast %79 : vector<8x128xf32> to vector<1x8x128xf32>
      %cst_36 = arith.constant dense<0.000000e+00> : vector<1xf32>
      %81 = vector.multi_reduction <add>, %80, %cst_36 [1, 2] : vector<1x8x128xf32> to vector<1xf32>
      %82 = vector.shape_cast %81 : vector<1xf32> to vector<1x1x1xf32>
      %83 = vector.extract %82[0, 0, 0] : f32 from vector<1x1x1xf32>
      %c0_37 = arith.constant 0 : index
      %c0_38 = arith.constant 0 : index
      %84 = vector.load %arg7[%c0_37, %c0_38] : memref<8x128xf32, #tpu.memory_space<vmem>>, vector<8x128xf32>
      %85 = vector.shape_cast %84 : vector<8x128xf32> to vector<1x8x128xf32>
      %cst_39 = arith.constant dense<0.000000e+00> : vector<1xf32>
      %86 = vector.multi_reduction <add>, %85, %cst_39 [1, 2] : vector<1x8x128xf32> to vector<1xf32>
      %87 = vector.shape_cast %86 : vector<1xf32> to vector<1x1x1xf32>
      %88 = vector.extract %87[0, 0, 0] : f32 from vector<1x1x1xf32>
      %89 = tpu.iota {dimensions = array<i32: 0>} : vector<8x128xi32>
      %c0_i32_40 = arith.constant 0 : i32
      %90 = vector.broadcast %c0_i32_40 : i32 to vector<8x128xi32>
      %91 = arith.cmpi eq, %89, %90 : vector<8x128xi32>
      %c1_i32_41 = arith.constant 1 : i32
      %92 = vector.broadcast %c1_i32_41 : i32 to vector<8x128xi32>
      %93 = arith.cmpi eq, %89, %92 : vector<8x128xi32>
      %94 = vector.broadcast %83 : f32 to vector<8x128xf32>
      %95 = vector.broadcast %88 : f32 to vector<8x128xf32>
      %96 = arith.select %93, %94, %95 : vector<8x128xi1>, vector<8x128xf32>
      %97 = vector.broadcast %78 : f32 to vector<8x128xf32>
      %98 = arith.select %91, %97, %96 : vector<8x128xi1>, vector<8x128xf32>
      %c0_42 = arith.constant 0 : index
      %c0_43 = arith.constant 0 : index
      %c0_44 = arith.constant 0 : index
      %99 = vector.load %arg4[%c0_42, %c0_43, %c0_44] : memref<1x8x128xf32, #tpu.memory_space<vmem>>, vector<1x8x128xf32>
      %100 = vector.shape_cast %99 : vector<1x8x128xf32> to vector<8x128xf32>
      %101 = vector.shape_cast %98 : vector<8x128xf32> to vector<1x8x128xf32>
      tpu.vector_store %arg4[%c0_42, %c0_43, %c0_44], %101 {strides = array<i32>} : memref<1x8x128xf32, #tpu.memory_space<vmem>>, vector<1x8x128xf32>,
    } else {
    }
    return
  }
  func.func @transform_0(%arg0: i32, %arg1: i32) -> (i32, i32, i32, i32) {
    %c0_i32 = arith.constant 0 : i32
    %c0_i32_0 = arith.constant 0 : i32
    %c0_i32_1 = arith.constant 0 : i32
    return %arg0, %c0_i32, %arg1, %c0_i32_0 : i32, i32, i32, i32
  }
  func.func @transform_1(%arg0: i32, %arg1: i32) -> (i32, i32, i32) {
    %c0_i32 = arith.constant 0 : i32
    %c0_i32_0 = arith.constant 0 : i32
    return %arg0, %arg1, %c0_i32 : i32, i32, i32
  }
  func.func @transform_2(%arg0: i32, %arg1: i32) -> (i32, i32, i32) {
    %c0_i32 = arith.constant 0 : i32
    %c0_i32_0 = arith.constant 0 : i32
    %c0_i32_1 = arith.constant 0 : i32
    return %arg0, %c0_i32, %c0_i32_0 : i32, i32, i32
  }
}

</mosaic_0001>

<bundles_post_ra>
// kernel: tpu_custom_call.1
= control target key start
LH: loop header
LB: loop body
LE: loop exit
PB: predicated region body
PF: predicated region fallthrough
CT: control target
= control target key end

     0   :  { %7 = vsyncpa [#allocation6], 0  ;;  %s943_s0 = inlined_call_operand.hbm [shape: f32[2,4,8,128], index: 0, kind: input, shape index: {}]   ;;  %s944_s1 = inlined_call_operand.hbm [shape: s32[2,8,128], index: 1, kind: input, shape index: {}]   ;;  %s945_s2 = inlined_call_operand.hbm [shape: f32[2,8,128], index: 2, kind: output, shape index: {}]  }
   0x1   :  { %9 = vsyncpa [#allocation6 + $0x1], 0 }
   0x2   :  { %10 = vsyncpa [#allocation9], 0 }
   0x3   :  { %12 = vsyncpa [#allocation9 + $0x1], 0 }
   0x4   :  { %13 = vsyncpa [#allocation7], 0 }
   0x5   :  { %15 = vsyncpa [#allocation7 + $0x1], 0  ;;  %s724_s9 = smov 0   ;;  %s726_s10 = smov 0  }
   0x6   :  { %s728_s11 = smov 0   ;;  %s730_s12 = smov 0  }
   0x7   :  { %s732_s13 = smov 0   ;;  %s734_s14 = smov 0  }
   0x8 LB: > { %s447_s15 = sadd.s32 4294967295, %s701_s14   ;;  %s448_s16 = sadd.s32 4294967294, %s701_s14   ;;  %s701_s14 = sphi %s734_s14, %s21_s14   ;;  %s697_s13 = sphi %s732_s13, %s964_s13   ;;  %s693_s12 = sphi %s730_s12, %s963_s12   ;;  %s689_s11 = sphi %s728_s11, %s962_s11   ;;  %s685_s10 = sphi %s726_s10, %s961_s10   ;;  %s681_s9 = sphi %s724_s9, %s960_s9  }
   0x9   : > { %s33_s17 = sadd.s32 1, %s697_s13  ;;  %s42_s18 = sadd.s32 1, %s689_s11 }
   0xa   : > { %p35_p0 = scmp.ge.s32.totalorder %s33_s17, 2  ;;  %p49_p1 = scmp.ne.s32.totalorder %s689_s11, %s685_s10 }
   0xb   : > { %p50_p2 = scmp.eq.s32.totalorder %s701_s14, 0  ;;  %p55_p3 = scmp.ne.s32.totalorder %s685_s10, %s681_s9 }
   0xc   : > { %s966_s17 = smov (%p35_p0, %s33_s17), 0  ;;  %p56_p5 = scmp.eq.s32.totalorder %s447_s15, 0 }
   0xd   : > { %p765_p4 = por %p50_p2, %p49_p1  ;;  %s37_s20 = ssub.s32 %s697_s13, %s966_s17 }
   0xe   : > { %p107_p6 = scmp.eq.s32.totalorder %s447_s15, 1  ;;  %p40_p7 = scmp.eq.s32.totalorder %s37_s20, 0 }
   0xf   : > { %p771_p8 = por %p56_p5, %p55_p3  ;;  %p113_p10 = scmp.eq.s32.totalorder %s448_s16, 1 }
  0x10   : > { %p775_p9 = por %p107_p6, %p49_p1  ;;  %p492_p13 = scmp.lt.s32.totalorder %s701_s14, 2 }
  0x11   : > { %s949_s21 = scalar_select %p771_p8, 1, 0 }
  0x12   : > { %s950_s22 = scalar_select %p775_p9, 1, 0 }
  0x13   : > { %s780_s23 = scalar_select %p40_p7, %s689_s11, %s42_s18  }
  0x14   : > { %p782_p11 = por %p113_p10, %p55_p3  ;;  %s789_s25 = sand.u32 1, %s689_s11  }
  0x15   : > { %s451_s26 = sshll.u32 %s789_s25, 5  ;;  %s468_s27 = sshll.u32 %s697_s13, 9 }
  0x16   : > { %s951_s24 = scalar_select %p782_p11, 1, 0 }
  0x17   : > { %s796_s30 = scalar_lea.hbm %s943_s0, %s468_s27  ;;  %s137_s3 = scalar_lea.vmem [#allocation5], %s451_s26 }
  0x18   : > { %s145_s4 = sshll.u32 %s137_s3, 4  ;;  %p802_p0 = pnand %p492_p13, %p765_p4  ;;  %s798_s4 = int_to_ptr.vmem [resolvable:$true] %s145_s4 }
  0x19   : > { %s134_s6 = scalar_lea.sflag [#allocation6], %s789_s25  ;;  %s555_s7 = scalar_lea.hbm %s796_s30, 512 }
  0x1a   : > { %p556_p2 = scmp.ne.s32.totalorder %s796_s30, %s555_s7  ;;  %p557_p3 = pneg %p802_p0 }
  0x1b   : > { %s560_s16 = scalar_lea.hbm %s943_s0, 1024  ;;  %p561_p4 = scmp.lt.u32.totalorder %s796_s30, %s943_s0 }
  0x1c   : > { %p558_p5 = pnand %p557_p3, %p556_p2  ;;  %p562_p7 = scmp.lt.u32.totalorder %s560_s16, %s555_s7 }
  0x1d   : > { %p564_p13 = scmp.lt.u32.totalorder %s555_s7, %s796_s30 }
  0x1e   : > { %p559_p6 = pneg %p558_p5  ;;  %p563_p10 = por %p562_p7, %p561_p4 }
  0x20   : > { %p565_p12 = por %p564_p13, %p563_p10 }
  0x22   : > { %p566_p1 = pnand %p565_p12, %p559_p6 }
  0x24   : > { %569 = shalt.err (!%p566_p1)
}
  0x25   : > { %s570_s20 = scalar_lea.vmem %s798_s4, 512  ;;  %s703_s26 = smov [#allocation5]  }
  0x26   : > { %p571_p2 = scmp.ne.s32.totalorder %s798_s4, %s570_s20  ;;  %s575_s27 = sshll.u32 %s703_s26, 4  ;;  %s576_s27 = int_to_ptr.vmem [resolvable:$false] %s575_s27 }
  0x27   : > { %s577_s28 = scalar_lea.vmem %s576_s27, 1024  ;;  %p578_p9 = scmp.lt.s32.totalorder %s798_s4, %s576_s27 }
  0x28   : > { %p573_p5 = pnand %p571_p2, %p557_p3  ;;  %p579_p4 = scmp.lt.s32.totalorder %s577_s28, %s570_s20 }
  0x2a   : > { %p574_p11 = pneg %p573_p5  ;;  %p580_p7 = por %p579_p4, %p578_p9 }
  0x2c   : > { %p581_p10 = pnand %p580_p7, %p574_p11 }
  0x2e   : > { %584 = shalt.err (!%p581_p10)
}
  0x2f   : > { %s704_s29 = smov 128   ;;  %s705_s3 = smov 8  }
  0x30   : > { %484 = dma.hbm_to_vmem [thread:$0]  (!%p802_p0), %s796_s30, 512, %s798_s4, %s134_s6, %s704_s29, %s704_s29, %s705_s3  }
  0x31   : > { %p172_p12 = scmp.lt.s32.totalorder %s701_s14, 3  ;;  %s454_s7 = sshll.u32 %s789_s25, 3 }
  0x32   : > { %s455_s8 = sshll.u32 %s697_s13, 7  ;;  %p953_p9 = scmp.ge.s32.totalorder %s701_s14, 1 }
  0x33   : > { %s847_s19 = scalar_lea.hbm %s944_s1, %s455_s8  ;;  %s159_s20 = scalar_lea.vmem [#allocation8], %s454_s7 }
  0x34   : > { %p840_p11 = pnand %p953_p9, %p172_p12  ;;  %s167_s26 = sshll.u32 %s159_s20, 4  ;;  %s168_s26 = int_to_ptr.vmem [resolvable:$true] %s167_s26 }
  0x35   : > { %s156_s30 = scalar_lea.sflag [#allocation9], %s789_s25  ;;  %s585_s4 = scalar_lea.hbm %s847_s19, 128 }
  0x36   : > { %s954_s15 = scalar_select %p840_p11, 1, 0 }
  0x37   : > { %p586_p1 = scmp.ne.s32.totalorder %s847_s19, %s585_s4  ;;  %s590_s28 = scalar_lea.hbm %s944_s1, 256 }
  0x38   : > { %p591_p2 = scmp.lt.u32.totalorder %s847_s19, %s944_s1  ;;  %p592_p5 = scmp.lt.u32.totalorder %s590_s28, %s585_s4 }
  0x39   : > { %p588_p6 = pnand %p586_p1, %p557_p3  ;;  %p594_p7 = scmp.lt.u32.totalorder %s585_s4, %s847_s19 }
  0x3a   : > { %p593_p4 = por %p592_p5, %p591_p2 }
  0x3b   : > { %p589_p13 = pneg %p588_p6 }
  0x3c   : > { %p595_p10 = por %p594_p7, %p593_p4 }
  0x3e   : > { %p596_p12 = pnand %p595_p10, %p589_p13 }
  0x40   : > { %599 = shalt.err (!%p596_p12)
}
  0x41   : > { %s600_s25 = scalar_lea.vmem %s168_s26, 128  ;;  %s706_s7 = smov [#allocation8]  }
  0x42   : > { %p601_p9 = scmp.ne.s32.totalorder %s168_s26, %s600_s25  ;;  %s605_s8 = sshll.u32 %s706_s7, 4  ;;  %s606_s8 = int_to_ptr.vmem [resolvable:$false] %s605_s8 }
  0x43   : > { %s607_s16 = scalar_lea.vmem %s606_s8, 256  ;;  %p608_p8 = scmp.lt.s32.totalorder %s168_s26, %s606_s8 }
  0x44   : > { %p603_p1 = pnand %p601_p9, %p557_p3  ;;  %p609_p11 = scmp.lt.s32.totalorder %s607_s16, %s600_s25 }
  0x46   : > { %p604_p6 = pneg %p603_p1  ;;  %p610_p2 = por %p609_p11, %p608_p8 }
  0x48   : > { %p611_p5 = pnand %p610_p2, %p604_p6 }
  0x4a   : > { %614 = shalt.err (!%p611_p5)
}
  0x4b   : > { %487 = dma.hbm_to_vmem [thread:$0]  (!%p802_p0), %s847_s19, 128, %s168_s26, %s156_s30  }
  0x4c   : > { %p955_p13 = scmp.ne.s32.totalorder %s954_s15, 0 }
  0x4d   : > { %s872_s18 = sand.u32 (!%p955_p13), 1, %s685_s10   ;;  %p956_p3 = scmp.ne.s32.totalorder (!%p955_p13), %s949_s21, 0 }
  0x4e   : > { %176 = sbr.rel (%p955_p13) target bundleno = 359 (0x167), region = 28  ;;  %s457_s20 = sshll.u32 (!%p955_p13), %s872_s18, 5 }
  0x4f   : > { %s179_s4 = scalar_lea.sflag (!%p955_p13), [#allocation6], %s872_s18  ;;  %s182_s6 = scalar_lea.vmem (!%p955_p13), [#allocation5], %s457_s20 }
  0x55   : > { %668 = dma.done.wait (%p956_p3), %s179_s4, 512  }
  0x56   : > { %670 = vsyncadd (%p956_p3), %s179_s4, 4294966784  ;;  %s458_s5 = sshll.u32 %s872_s18, 3  ;;  %s188_s15 = scalar_lea.sflag [#allocation9], %s872_s18 }
  0x57   : > { %s191_s19 = scalar_lea.vmem [#allocation8], %s458_s5 }
  0x58   : > { %672 = dma.done.wait (%p956_p3), %s188_s15, 128  }
  0x59   : > { %674 = vsyncadd (%p956_p3), %s188_s15, 4294967168  ;;  %v228_v0 = vld [vmem:[%s182_s6] sm:$0xff]  ;;  %v460_v1 = vld [vmem:[%s182_s6 + $0x8] sm:$0xff]  ;;  %v707_v12 = vmov 0.0   ;;  %v316_v60 = vlaneseq  ;;  %s465_s26 = sshll.u32 %s693_s12, 7  ;;  %s216_s27 = scalar_lea.vmem [#allocation10], %s458_s5 }
  0x5a   : > { %v461_v2 = vld [vmem:[%s182_s6 + $0x10] sm:$0xff]  ;;  %v238_v3 = vmax.f32 %v228_v0, %v460_v1  ;;  %v462_v4 = vld [vmem:[%s182_s6 + $0x18] sm:$0xff]  ;;  %v227_v6 = vld [vmem:[%s191_s19] sm:$0xff]  ;;  %s340_s28 = sshll.u32 %s216_s27, 4  ;;  %s894_s7 = scalar_lea.hbm %s945_s2, %s465_s26  ;;  %s896_s28 = int_to_ptr.vmem [resolvable:$true] %s340_s28 }
  0x5b   : > { %v274_v8 = vcvt.s32.f32 %v227_v6  ;;  %vm244_vm1 = vcmp.eq.s32.totalorder %v227_v6, 0  ;;  %vm250_vm2 = vcmp.eq.s32.totalorder %v227_v6, 1  ;;  %vm257_vm3 = vcmp.eq.s32.totalorder %v227_v6, 2  ;;  %s327_s12 = scalar_lea.sflag [#allocation7], %s872_s18  ;;  %s615_s8 = scalar_lea.vmem %s896_s28, 128 }
  0x5c   : > { %v239_v5 = vmax.f32 %v238_v3, %v461_v2  ;;  %v245_v23 = vsel %vm244_vm1, %v228_v0, 0.0  ;;  %v251_v25 = vsel %vm250_vm2, %v460_v1, 0.0  ;;  %v258_v29 = vsel %vm257_vm3, %v461_v2, 0.0  ;;  %p616_p8 = scmp.ne.s32.totalorder %s896_s28, %s615_s8  ;;  %p957_p0 = scmp.ne.s32.totalorder %s950_s22, 0 }
  0x5d   : > { %v252_v28 = vadd.f32 %v251_v25, %v245_v23  ;;  %vm264_vm4 = vcmp.eq.s32.totalorder %v227_v6, 3  ;;  %v317_v61 = vshrl.u32 %v316_v60, 7  ;;  %s708_s16 = smov [#allocation10]  }
  0x5e   : > { %v240_v7 = vmax.f32 %v239_v5, %v462_v4  ;;  %v265_v32 = vsel %vm264_vm4, %v462_v4, 0.0  ;;  %p617_p11 = pnand %p616_p8, %p957_p0  ;;  %s619_s20 = sshll.u32 %s708_s16, 4  ;;  %s620_s20 = int_to_ptr.vmem [resolvable:$false] %s619_s20 }
  0x5f   : > { %v259_v31 = vadd.f32 %v258_v29, %v252_v28  ;;  %vm319_vm5 = vcmp.eq.s32.totalorder %v317_v61, 1  ;;  %vm318_vm6 = vcmp.eq.s32.totalorder %v317_v61, 0  ;;  %s621_s4 = scalar_lea.vmem %s620_s20, 256  ;;  %p622_p7 = scmp.lt.s32.totalorder %s896_s28, %s620_s20 }
  0x60   : > { %v241_v9 = vsub.f32 %v228_v0, %v240_v7  ;;  %v246_v10 = vsub.f32 %v460_v1, %v240_v7  ;;  %v253_v11 = vsub.f32 %v461_v2, %v240_v7  ;;  %vm271_vm0 = vcmp.lt.f32.partialorder %v228_v0, %v240_v7  ;;  %p618_p4 = pneg %p617_p11  ;;  %p623_p10 = scmp.lt.s32.totalorder %s621_s4, %s615_s8 }
  0x61   : > { %v463_v13 = vsel %vm271_vm0, 1.0, %v707_v12  ;;  %v260_v14 = vsub.f32 %v462_v4, %v240_v7  ;;  %v266_v33 = vadd.f32 %v265_v32, %v259_v31 }
  0x62   : > { %v242_v15 = vmul.f32 1.442695, %v241_v9  ;;  %v247_v16 = vmul.f32 1.442695, %v246_v10  ;;  %v254_v17 = vmul.f32 1.442695, %v253_v11  ;;  %v278_v18 = vadd.f32 %v463_v13, %v274_v8  ;;  %p624_p12 = por %p623_p10, %p622_p7 }
  0x63   : > { %v261_v19 = vmul.f32 1.442695, %v260_v14  ;;  %v267_v34 = vsub.f32 %v240_v7, %v266_v33  ;;  %v276_v38 = vmul.f32 %v463_v13, %v274_v8 }
  0x64   : > { %545 = vpow2.f32 %v242_v15  ;;  %307 = vadd.xlane.f32.xlu1 %v278_v18  ;;  %p625_p9 = pnand %p624_p12, %p618_p4 }
  0x65   : > { %547 = vpow2.f32 %v247_v16 }
  0x66   : > { %549 = vpow2.f32 %v254_v17 }
  0x67   : > { %551 = vpow2.f32 %v261_v19 }
  0x6e   : > { %v546_v20 = vpop.eup %545 }
  0x6f   : > { %v548_v21 = vpop.eup %547 }
  0x70   : > { %v550_v22 = vpop.eup %549  ;;  %v249_v24 = vadd.f32 %v548_v21, %v546_v20 }
  0x71   : > { %v552_v26 = vpop.eup %551 }
  0x72   : > { %v256_v27 = vadd.f32 %v550_v22, %v249_v24 }
  0x74   : > { %v263_v30 = vadd.f32 %v552_v26, %v256_v27 }
  0x76   : > { %553 = vlog2.f32 %v263_v30 }
  0x80   : > { %v554_v35 = vpop.eup %553 }
  0x81   : > { %v269_v36 = vmul.f32 0.6931472, %v554_v35 }
  0x83   : > { %v270_v37 = vadd.f32 %v269_v36, %v267_v34 }
  0x85   : > { %287 = vadd.xlane.f32.xlu0 %v270_v37 }
  0x89   : > { %297 = vadd.xlane.f32.xlu0 %v276_v38 }
  0xf1   : > { %v308_v39 = vpop.xlane.xlu1 %307 }
  0xf2   : > { %v309_v40 = vrot.slane %v308_v39, 4 }
  0xf4   : > { %v310_v41 = vadd.f32 %v309_v40, %v308_v39 }
  0xf6   : > { %v311_v45 = vrot.slane %v310_v41, 2 }
  0xf8   : > { %v312_v51 = vadd.f32 %v311_v45, %v310_v41 }
  0xfa   : > { %v313_v56 = vrot.slane %v312_v51, 1 }
  0xfc   : > { %v314_v59 = vadd.f32 %v313_v56, %v312_v51 }
 0x112   : > { %v288_v42 = vpop.xlane.xlu0 %287 }
 0x113   : > { %v289_v43 = vrot.slane %v288_v42, 4 }
 0x115   : > { %v290_v44 = vadd.f32 %v289_v43, %v288_v42 }
 0x116   : > { %v298_v46 = vpop.xlane.xlu0 %297 }
 0x117   : > { %v291_v47 = vrot.slane %v290_v44, 2  ;;  %v299_v48 = vrot.slane %v298_v46, 4 }
 0x119   : > { %v300_v49 = vadd.f32 %v299_v48, %v298_v46  ;;  %v292_v50 = vadd.f32 %v291_v47, %v290_v44 }
 0x11b   : > { %v301_v52 = vrot.slane %v300_v49, 2  ;;  %v293_v53 = vrot.slane %v292_v50, 1 }
 0x11d   : > { %v302_v54 = vadd.f32 %v301_v52, %v300_v49  ;;  %v294_v55 = vadd.f32 %v293_v53, %v292_v50 }
 0x11f   : > { %469 = vpush %v294_v55  ;;  %v303_v57 = vrot.slane %v302_v54, 1 }
 0x121   : > { %v304_v58 = vadd.f32 %v303_v57, %v302_v54 }
 0x123   : > { %471 = vpush %v304_v58 }
 0x124   : > { %473 = vpush %v314_v59 }
 0x150   : > { %s470_s21 = spop %469 }
 0x151   : > { %v323_v0 = vstv %s470_s21 }
 0x154   : > { %s472_s30 = spop %471 }
 0x155   : > { %v320_v62 = vstv %s472_s30  ;;  %s474_s29 = spop %473 }
 0x156   : > { %v321_v63 = vstv %s474_s29 }
 0x157   : > { %v322_v1 = vsel %vm319_vm5, %v320_v62, %v321_v63 }
 0x158   : > { %v324_v2 = vsel %vm318_vm6, %v323_v0, %v322_v1 }
 0x159   : > { %325 = vst [vmem:[%s216_s27] sm:$0xff] %v324_v2 }
 0x15a   : > { %628 = shalt.err (!%p625_p9)
}
 0x15b   : > { %s629_s18 = scalar_lea.hbm %s894_s7, 128  ;;  %s633_s15 = scalar_lea.hbm %s945_s2, 256 }
 0x15c   : > { %p630_p1 = scmp.ne.s32.totalorder %s894_s7, %s629_s18  ;;  %p634_p5 = scmp.lt.u32.totalorder %s894_s7, %s945_s2 }
 0x15d   : > { %p635_p13 = scmp.lt.u32.totalorder %s633_s15, %s629_s18  ;;  %p637_p8 = scmp.lt.u32.totalorder %s629_s18, %s894_s7 }
 0x15e   : > { %p631_p6 = pnand %p630_p1, %p957_p0 }
 0x15f   : > { %p636_p3 = por %p635_p13, %p634_p5 }
 0x160   : > { %p632_p2 = pneg %p631_p6 }
 0x161   : > { %p638_p11 = por %p637_p8, %p636_p3 }
 0x163   : > { %p639_p4 = pnand %p638_p11, %p632_p2 }
 0x165   : > { %642 = shalt.err (!%p639_p4)
}
 0x166   : > { %479 = dma.vmem_to_hbm [thread:$0]  (%p957_p0), %s896_s28, 128, %s894_s7, %s327_s12  }
 0x167 PF: > { %s352_s26 = sand.u32 1, %s681_s9   ;;  %p958_p7 = scmp.ne.s32.totalorder %s951_s24, 0 }
 0x168   : > { %p959_p10 = scmp.ge.s32.totalorder %s701_s14, 2  ;;  %s353_s30 = scalar_lea.sflag [#allocation7], %s352_s26 }
 0x16a   : > { %p489_p12 = pnand %p959_p10, %p958_p7 }
 0x16c   : > { %676 = dma.done.wait (!%p489_p12), %s353_s30, 128  }
 0x16d   : > { %678 = vsyncadd (!%p489_p12), %s353_s30, 4294967168  ;;  %s21_s14 = sadd.s32 1, %s701_s14   ;;  %s960_s9 = smov %s685_s10 }
 0x16e   : > { %p18_p9 = scmp.ge.s32.totalorder %s21_s14, 4   ;;  %s961_s10 = smov %s689_s11 }
 0x16f   : > { %s962_s11 = smov %s780_s23  ;;  %s963_s12 = smov %s697_s13 }
 0x170   : > { %s964_s13 = smov %s966_s17  ;;  %20 = sbr.rel (!%p18_p9) target bundleno = 8 (0x8), region = 97 }
 0x177   :  { %358 = vsyncpa [#allocation6], 1 }
 0x178   :  { %360 = vsyncpa [#allocation6 + $0x1], 1 }
 0x179   :  { %361 = vsyncpa [#allocation9], 1 }
 0x17a   :  { %363 = vsyncpa [#allocation9 + $0x1], 1 }
 0x17b   :  { %364 = vsyncpa [#allocation7], 1 }
 0x17c   :  { %366 = vsyncpa [#allocation7 + $0x1], 1 }

</bundles_post_ra>
